<compile_context>
chip_gen: v7x
topology: tpu7x:2x2x1
jax: 0.10.0
libtpu: 0.0.40
codegen_flags: <defaults>
</compile_context>

<pallas_src>
import functools

import jax
import jax.numpy as jnp
from jax.experimental import pallas as pl
from jax.experimental.pallas import tpu as pltpu


def _round_up(x, m):
    return ((x + m - 1) // m) * m


_NEG = -1e30                              # additive mask for invalid (t, col)
_VMEM_LIMIT_BYTES = 48 * 1024 * 1024      # explicit scoped-VMEM limit
_VMEM_BUDGET_BYTES = 36 * 1024 * 1024     # conservative live-value budget (v5e/v6e/v7x)


def _inception_kernel(x_ref, w_ref, mask_ref, b_ref, out_ref, *,
                      h_pad, tn, g_pad, max_fh):
    """Fused conv(all windows) + masked max-pool(T) + bias + ReLU.

    x_ref   : (h_pad, tn, W)       time-major bf16 embedding tile
    w_ref   : (W, max_fh*g_pad)    bf16 concatenated per-dh weight slabs
    mask_ref: (h_pad, 1, g_pad)    f32 additive validity mask (0 / -1e30)
    b_ref   : (1, g_pad)           f32 packed biases
    out_ref : (tn, g_pad)          f32 pooled features (lane-dense 128-multiple)
    """
    wdim = x_ref.shape[-1]
    # Single flattened 2D matmul: M = h_pad*tn, K = W, N = max_fh*g_pad.
    x2d = x_ref[...].reshape(h_pad * tn, wdim)
    y = jnp.dot(x2d, w_ref[...], preferred_element_type=jnp.float32)
    y3 = y.reshape(h_pad, tn, max_fh * g_pad)        # free relayout (tn%8==0, cols%128==0)

    # conv[t] = sum_dh Y_dh[t + dh].  The time axis is the OUTER axis here, so
    # the shifts are aligned whole-slab slices + concats (no relayout/roll).
    conv = y3[:, :, 0:g_pad]
    for dh in range(1, max_fh):
        shifted = jnp.concatenate(
            [y3[dh:, :, dh * g_pad:(dh + 1) * g_pad],
             jnp.zeros((dh, tn, g_pad), jnp.float32)], axis=0)
        conv = conv + shifted

    # -inf mask on invalid time rows, max-pool over time, then bias + ReLU
    # (exact: bias is constant over T and ReLU is monotone).
    pooled = jnp.max(conv + mask_ref[...], axis=0)              # (tn, g_pad)
    out_ref[...] = jnp.maximum(pooled + b_ref[...], 0.0)


def _run_inception(x_tm, w_cat, mask, bias, *, tn, h_pad, g_pad, max_fh):
    _, n_pad, wdim = x_tm.shape
    kernel = functools.partial(_inception_kernel, h_pad=h_pad, tn=tn,
                               g_pad=g_pad, max_fh=max_fh)
    return pl.pallas_call(
        kernel,
        out_shape=jax.ShapeDtypeStruct((n_pad, g_pad), jnp.float32),
        grid=(n_pad // tn,),
        in_specs=[
            pl.BlockSpec((h_pad, tn, wdim), lambda i: (0, i, 0)),
            pl.BlockSpec((wdim, max_fh * g_pad), lambda i: (0, 0)),
            pl.BlockSpec((h_pad, 1, g_pad), lambda i: (0, 0, 0)),
            pl.BlockSpec((1, g_pad), lambda i: (0, 0)),
        ],
        out_specs=pl.BlockSpec((tn, g_pad), lambda i: (i, 0)),
        compiler_params=pltpu.CompilerParams(
            dimension_semantics=("parallel",),
            vmem_limit_bytes=_VMEM_LIMIT_BYTES),
    )(x_tm, w_cat, mask, bias)


class InceptionModulePallas:
    """JAX/Pallas port of InceptionModule (conv + ReLU + full-time max-pool per window)."""

    def __init__(self, img_h, img_w, filter_windows, filter_num, key):
        assert img_h >= max(filter_windows), "img_h must cover the largest filter window"
        self.img_h = img_h
        self.img_w = img_w
        self.filter_windows = tuple(filter_windows)
        self.filter_num = filter_num
        self.nw = len(self.filter_windows)
        self.num_feature_maps = self.nw * filter_num
        self.max_fh = max(self.filter_windows)
        self.h_pad = _round_up(img_h, 8)                     # sublane-aligned time axis
        self.g_pad = _round_up(self.num_feature_maps, 128)   # shared packed lane slab

        w_cat = jnp.zeros((img_w, self.max_fh * self.g_pad), jnp.float32)
        bias = jnp.zeros((1, self.g_pad), jnp.float32)
        mask = jnp.full((self.h_pad, 1, self.g_pad), _NEG, jnp.float32)
        self.ref_weights = []
        self.ref_biases = []
        for wi, fh in enumerate(self.filter_windows):
            key, kw, kb = jax.random.split(key, 3)
            # torch Conv2d weight shape: (F, 1, fh, W); generated then repacked.
            w_t = jax.random.normal(kw, (filter_num, 1, fh, img_w), jnp.float32) * 0.1
            b_t = jax.random.normal(kb, (filter_num,), jnp.float32) * 0.1
            w_k = jnp.transpose(w_t[:, 0, :, :], (1, 2, 0))           # (fh, W, F)
            w_k = w_k.astype(jnp.bfloat16).astype(jnp.float32)        # match kernel quantization
            col0 = wi * filter_num
            for dh in range(fh):
                w_cat = w_cat.at[:, dh * self.g_pad + col0:
                                 dh * self.g_pad + col0 + filter_num].set(w_k[dh])
            bias = bias.at[0, col0:col0 + filter_num].set(b_t)
            mask = mask.at[:img_h - fh + 1, 0, col0:col0 + filter_num].set(0.0)
            self.ref_weights.append(w_k)
            self.ref_biases.append(b_t)
        self.w_cat = w_cat.astype(jnp.bfloat16)
        self.bias = bias
        self.mask = mask

    def _choose_tile_n(self, n8):
        # Per-example live bytes inside the kernel: double-buffered bf16 input,
        # f32 matmul result Y, shifted-sum conv, double-buffered f32 output.
        per_row = (self.h_pad * self.img_w * 2 * 2
                   + self.h_pad * self.max_fh * self.g_pad * 4
                   + self.h_pad * self.g_pad * 4
                   + self.g_pad * 4 * 2)
        tn = max(8, min(256, (_VMEM_BUDGET_BYTES // per_row) // 8 * 8))
        # Prefer >=2 grid steps so v7x's two TensorCores both get work.
        half = max(8, _round_up(-(-n8 // 2), 8))
        return min(tn, half)

    def __call__(self, q_input, a_input):
        # q_input, a_input: NCHW (B, 1, img_h, img_w)
        b = q_input.shape[0]
        q = q_input[:, 0, :, :]
        a = a_input[:, 0, :, :]
        x = jnp.concatenate([q, a], axis=0)                  # (2B, H, W): one pass serves both
        n = x.shape[0]
        n8 = _round_up(n, 8)                                 # full-width vld/vst
        tn = self._choose_tile_n(n8)
        n_pad = _round_up(n8, tn)
        x = jnp.pad(x, ((0, n_pad - n), (0, self.h_pad - self.img_h), (0, 0)))
        # Time-major bf16 layout; concat+pad+cast+transpose fuse into one XLA pass.
        x_tm = jnp.transpose(x, (1, 0, 2)).astype(jnp.bfloat16)   # (h_pad, n_pad, W)

        out = _run_inception(x_tm, self.w_cat, self.mask, self.bias,
                             tn=tn, h_pad=self.h_pad, g_pad=self.g_pad,
                             max_fh=self.max_fh)
        feats = out[:n, :self.num_feature_maps]              # strip batch + lane padding
        return feats[:b], feats[b:]


def _reference(q_input, a_input, module):
    """Plain-JAX reference with identical semantics (uses the same bf16-quantized params)."""
    def one(x):  # x: (B, 1, H, W)
        xs = x[:, 0, :, :].astype(jnp.bfloat16).astype(jnp.float32)
        outs = []
        for wi, fh in enumerate(module.filter_windows):
            w = module.ref_weights[wi]               # (fh, W, F)
            bvec = module.ref_biases[wi]             # (F,)
            t = module.img_h - fh + 1
            acc = jnp.einsum("ntw,wf->ntf", xs[:, 0:t, :], w[0])
            for dh in range(1, fh):
                acc = acc + jnp.einsum("ntw,wf->ntf", xs[:, dh:dh + t, :], w[dh])
            s = jnp.maximum(acc + bvec[None, None, :], 0.0)  # ReLU(conv + b)
            outs.append(jnp.max(s, axis=1))                  # max-pool over T
        return jnp.concatenate(outs, axis=1)
    return one(q_input), one(a_input)


if __name__ == "__main__":
    # Small shapes: batch=2, channels=1, sentence length (img_h)=8, embed (img_w)=32
    B, IMG_H, IMG_W = 2, 8, 32
    FILTER_WINDOWS = (1, 2, 3)
    FILTER_NUM = 4

    key = jax.random.PRNGKey(0)
    key, kq, ka, kparams = jax.random.split(key, 4)
    q_input = jax.random.normal(kq, (B, 1, IMG_H, IMG_W), jnp.float32)
    a_input = jax.random.normal(ka, (B, 1, IMG_H, IMG_W), jnp.float32)

    module = InceptionModulePallas(IMG_H, IMG_W, FILTER_WINDOWS, FILTER_NUM, kparams)

    q_vec, a_vec = module(q_input, a_input)
    q_vec = jax.block_until_ready(q_vec)
    a_vec = jax.block_until_ready(a_vec)

    q_ref, a_ref = _reference(q_input, a_input, module)
    assert q_vec.shape == (B, len(FILTER_WINDOWS) * FILTER_NUM)
    assert a_vec.shape == (B, len(FILTER_WINDOWS) * FILTER_NUM)
    assert jnp.allclose(q_vec, q_ref, atol=2e-3, rtol=2e-3)
    assert jnp.allclose(a_vec, a_ref, atol=2e-3, rtol=2e-3)

    print("KERNEL_OK")
</pallas_src>

<mosaic_0001>
module attributes {stable_mosaic.version = 11 : i64} {
  func.func @_inception_kernel(%arg0: i32, %arg1: memref<8x8x32xbf16, #tpu.memory_space<vmem>>, %arg2: memref<32x384xbf16, #tpu.memory_space<vmem>>, %arg3: memref<8x1x128xf32, #tpu.memory_space<vmem>>, %arg4: memref<1x128xf32, #tpu.memory_space<vmem>>, %arg5: memref<8x128xf32, #tpu.memory_space<vmem>>) attributes {dimension_semantics = [#tpu.dimension_semantics<parallel>], iteration_bounds = array<i64: 1>, scalar_prefetch = 0 : i64, scratch_operands = 0 : i64, tpu.core_type = #tpu.core_type<tc>, window_params = [{transform_indices = @transform_0, window_bounds = array<i64: 8, 8, 32>}, {pipeline_mode = #tpu.pipeline_mode<synchronous>, transform_indices = @transform_1, window_bounds = array<i64: 32, 384>}, {pipeline_mode = #tpu.pipeline_mode<synchronous>, transform_indices = @transform_2, window_bounds = array<i64: 8, 1, 128>}, {pipeline_mode = #tpu.pipeline_mode<synchronous>, transform_indices = @transform_3, window_bounds = array<i64: 1, 128>}, {transform_indices = @transform_4, window_bounds = array<i64: 8, 128>}]} {
    %c0 = arith.constant 0 : index
    %c0_0 = arith.constant 0 : index
    %c0_1 = arith.constant 0 : index
    %0 = vector.load %arg1[%c0, %c0_0, %c0_1] : memref<8x8x32xbf16, #tpu.memory_space<vmem>>, vector<8x8x32xbf16>
    %1 = vector.shape_cast %0 : vector<8x8x32xbf16> to vector<64x32xbf16>
    %c0_2 = arith.constant 0 : index
    %c0_3 = arith.constant 0 : index
    %2 = vector.load %arg2[%c0_2, %c0_3] : memref<32x384xbf16, #tpu.memory_space<vmem>>, vector<32x384xbf16>
    %cst = arith.constant dense<0.000000e+00> : vector<64x384xf32>
    %3 = tpu.matmul %1, %2, %cst {dimension_numbers = #tpu.dot_dimension_numbers<[1], [0], [0], [1], [0, 0, 1, 1], [], []>} : vector<64x32xbf16>, vector<32x384xbf16>, vector<64x384xf32> -> vector<64x384xf32>
    %4 = vector.shape_cast %3 : vector<64x384xf32> to vector<8x8x384xf32>
    %5 = vector.extract_strided_slice %4 {offsets = [0, 0, 0], sizes = [8, 8, 128], strides = [1, 1, 1]} : vector<8x8x384xf32> to vector<8x8x128xf32>
    %6 = vector.extract_strided_slice %4 {offsets = [1, 0, 128], sizes = [7, 8, 128], strides = [1, 1, 1]} : vector<8x8x384xf32> to vector<7x8x128xf32>
    %cst_4 = arith.constant 0.000000e+00 : f32
    %7 = vector.broadcast %cst_4 : f32 to vector<1x8x128xf32>
    %8 = tpu.concatenate %6, %7 in 0 : vector<7x8x128xf32>, vector<1x8x128xf32> -> vector<8x8x128xf32>
    %9 = arith.addf %5, %8 : vector<8x8x128xf32>
    %10 = vector.extract_strided_slice %4 {offsets = [2, 0, 256], sizes = [6, 8, 128], strides = [1, 1, 1]} : vector<8x8x384xf32> to vector<6x8x128xf32>
    %cst_5 = arith.constant 0.000000e+00 : f32
    %11 = vector.broadcast %cst_5 : f32 to vector<2x8x128xf32>
    %12 = tpu.concatenate %10, %11 in 0 : vector<6x8x128xf32>, vector<2x8x128xf32> -> vector<8x8x128xf32>
    %13 = arith.addf %9, %12 : vector<8x8x128xf32>
    %c0_6 = arith.constant 0 : index
    %c0_7 = arith.constant 0 : index
    %c0_8 = arith.constant 0 : index
    %14 = vector.load %arg3[%c0_6, %c0_7, %c0_8] : memref<8x1x128xf32, #tpu.memory_space<vmem>>, vector<8x1x128xf32>
    %15 = vector.broadcast %14 : vector<8x1x128xf32> to vector<8x8x128xf32>
    %16 = arith.addf %13, %15 : vector<8x8x128xf32>
    %cst_9 = arith.constant dense<0xFF800000> : vector<8x128xf32>
    %17 = vector.multi_reduction <maximumf>, %16, %cst_9 [0] : vector<8x8x128xf32> to vector<8x128xf32>
    %c0_10 = arith.constant 0 : index
    %c0_11 = arith.constant 0 : index
    %18 = vector.load %arg4[%c0_10, %c0_11] : memref<1x128xf32, #tpu.memory_space<vmem>>, vector<1x128xf32>
    %19 = vector.broadcast %18 : vector<1x128xf32> to vector<8x128xf32>
    %20 = arith.addf %17, %19 : vector<8x128xf32>
    %cst_12 = arith.constant 0.000000e+00 : f32
    %21 = vector.broadcast %cst_12 : f32 to vector<8x128xf32>
    %22 = arith.maximumf %20, %21 : vector<8x128xf32>
    %c0_13 = arith.constant 0 : index
    %c0_14 = arith.constant 0 : index
    %23 = vector.load %arg5[%c0_13, %c0_14] : memref<8x128xf32, #tpu.memory_space<vmem>>, vector<8x128xf32>
    tpu.vector_store %arg5[%c0_13, %c0_14], %22 {strides = array<i32>} : memref<8x128xf32, #tpu.memory_space<vmem>>, vector<8x128xf32>,
    return
  }
  func.func @transform_0(%arg0: i32) -> (i32, i32, i32) {
    %c0_i32 = arith.constant 0 : i32
    %c0_i32_0 = arith.constant 0 : i32
    %c0_i32_1 = arith.constant 0 : i32
    return %c0_i32, %arg0, %c0_i32_0 : i32, i32, i32
  }
  func.func @transform_1(%arg0: i32) -> (i32, i32) {
    %c0_i32 = arith.constant 0 : i32
    %c0_i32_0 = arith.constant 0 : i32
    %c0_i32_1 = arith.constant 0 : i32
    return %c0_i32, %c0_i32_0 : i32, i32
  }
  func.func @transform_2(%arg0: i32) -> (i32, i32, i32) {
    %c0_i32 = arith.constant 0 : i32
    %c0_i32_0 = arith.constant 0 : i32
    %c0_i32_1 = arith.constant 0 : i32
    %c0_i32_2 = arith.constant 0 : i32
    return %c0_i32, %c0_i32_0, %c0_i32_1 : i32, i32, i32
  }
  func.func @transform_3(%arg0: i32) -> (i32, i32) {
    %c0_i32 = arith.constant 0 : i32
    %c0_i32_0 = arith.constant 0 : i32
    %c0_i32_1 = arith.constant 0 : i32
    return %c0_i32, %c0_i32_0 : i32, i32
  }
  func.func @transform_4(%arg0: i32) -> (i32, i32) {
    %c0_i32 = arith.constant 0 : i32
    %c0_i32_0 = arith.constant 0 : i32
    return %arg0, %c0_i32 : i32, i32
  }
}

</mosaic_0001>

<bundles_post_ra>
// kernel: tpu_custom_call.1
= control target key start
LH: loop header
LB: loop body
LE: loop exit
PB: predicated region body
PF: predicated region fallthrough
CT: control target
= control target key end

     0   :  { %9 = vsyncpa [#allocation3], 0  ;;  %s650_s0 = inlined_call_operand.hbm [shape: bf16[8,8,32], index: 0, kind: input, shape index: {}]   ;;  %s651_s1 = inlined_call_operand.hbm [shape: bf16[32,384], index: 1, kind: input, shape index: {}]   ;;  %s652_s2 = inlined_call_operand.hbm [shape: f32[8,1,128], index: 2, kind: input, shape index: {}]   ;;  %s653_s3 = inlined_call_operand.vmem [shape: f32[1,128], index: 3, kind: input, shape index: {}]   ;;  %s654_s4 = inlined_call_operand.hbm [shape: f32[8,128], index: 4, kind: output, shape index: {}]  }
   0x1   :  { %10 = vsyncpa [#allocation6], 0 }
   0x2   :  { %11 = vsyncpa [#allocation4], 0  ;;  %s555_s15 = smov [#allocation5]   ;;  %s461_s19 = scalar_lea.hbm %s651_s1, 768 }
   0x3   :  { %s29_s16 = sshll.u32 %s555_s15, 4  ;;  %p462_p0 = scmp.ne.s32.totalorder %s651_s1, %s461_s19  ;;  %s30_s16 = int_to_ptr.vmem [resolvable:$true] %s29_s16 }
   0x4   :  { %p465_p1 = scmp.lt.u32.totalorder %s461_s19, %s651_s1 }
   0x6   :  { %p467_p2 = pnand %p465_p1, %p462_p0 }
   0x8   :  { %470 = shalt.err (!%p467_p2)
}
   0x9   :  { %s471_s24 = scalar_lea.vmem %s30_s16, 768  ;;  %p476_p4 = scmp.lt.s32.totalorder %s30_s16, %s30_s16 }
   0xa   :  { %p472_p3 = scmp.ne.s32.totalorder %s30_s16, %s471_s24  ;;  %p477_p5 = scmp.lt.s32.totalorder %s471_s24, %s471_s24 }
   0xc   :  { %p478_p6 = por %p477_p5, %p476_p4 }
   0xe   :  { %p479_p7 = pnand %p478_p6, %p472_p3 }
  0x10   :  { %482 = shalt.err (!%p479_p7)
}
  0x11   :  { %s556_s25 = smov 192   ;;  %s557_s26 = smov 12  }
  0x12   :  { %35 = dma.hbm_to_vmem [thread:$0]  %s651_s1, 768, %s30_s16, [#allocation6], %s556_s25, %s556_s25, %s557_s26  }
  0x13   :  { %s558_s29 = smov [#allocation2]   ;;  %s483_s7 = scalar_lea.hbm %s650_s0, 512 }
  0x14   :  { %s17_s30 = sshll.u32 %s558_s29, 4  ;;  %p484_p8 = scmp.ne.s32.totalorder %s650_s0, %s483_s7  ;;  %s18_s30 = int_to_ptr.vmem [resolvable:$true] %s17_s30 }
  0x15   :  { %p487_p9 = scmp.lt.u32.totalorder %s483_s7, %s650_s0 }
  0x17   :  { %p489_p10 = pnand %p487_p9, %p484_p8 }
  0x19   :  { %492 = shalt.err (!%p489_p10)
}
  0x1a   :  { %s493_s12 = scalar_lea.vmem %s18_s30, 512  ;;  %p498_p12 = scmp.lt.s32.totalorder %s18_s30, %s18_s30 }
  0x1b   :  { %p494_p11 = scmp.ne.s32.totalorder %s18_s30, %s493_s12  ;;  %p499_p13 = scmp.lt.s32.totalorder %s493_s12, %s493_s12 }
  0x1d   :  { %p500_p0 = por %p499_p13, %p498_p12 }
  0x1f   :  { %p501_p1 = pnand %p500_p0, %p494_p11 }
  0x21   :  { %504 = shalt.err (!%p501_p1)
}
  0x22   :  { %s559_s1 = smov 64   ;;  %s560_s13 = smov 4  }
  0x23   :  { %23 = dma.hbm_to_vmem [thread:$0]  %s650_s0, 512, %s18_s30, [#allocation3], %s559_s1, %s559_s1, %s560_s13  }
  0x24   :  { %s561_s16 = smov [#allocation7]   ;;  %s505_s20 = scalar_lea.hbm %s652_s2, 128 }
  0x25   :  { %s41_s17 = sshll.u32 %s561_s16, 4  ;;  %p506_p2 = scmp.ne.s32.totalorder %s652_s2, %s505_s20  ;;  %s42_s17 = int_to_ptr.vmem [resolvable:$true] %s41_s17 }
  0x26   :  { %p509_p3 = scmp.lt.u32.totalorder %s505_s20, %s652_s2 }
  0x28   :  { %p511_p4 = pnand %p509_p3, %p506_p2 }
  0x2a   :  { %514 = shalt.err (!%p511_p4)
}
  0x2b   :  { %s515_s25 = scalar_lea.vmem %s42_s17, 128  ;;  %p520_p6 = scmp.lt.s32.totalorder %s42_s17, %s42_s17 }
  0x2c   :  { %p516_p5 = scmp.ne.s32.totalorder %s42_s17, %s515_s25  ;;  %p521_p7 = scmp.lt.s32.totalorder %s515_s25, %s515_s25 }
  0x2e   :  { %p522_p8 = por %p521_p7, %p520_p6 }
  0x30   :  { %p523_p9 = pnand %p522_p8, %p516_p5 }
  0x32   :  { %526 = shalt.err (!%p523_p9)
}
  0x33   :  { %s562_s0 = smov 16   ;;  %s563_s26 = smov 1  }
  0x34   :  { %47 = dma.hbm_to_vmem [thread:$0]  %s652_s2, 128, %s42_s17, [#allocation6], %s562_s0, %s562_s0, %s563_s26  }
  0x35   :  { %549 = dma.done.wait [#allocation3], 512  }
  0x36   :  { %550 = vsyncadd [#allocation3], 4294966784 }
  0x37   :  { %551 = dma.done.wait [#allocation6], 896  }
  0x38   :  { %552 = vsyncadd [#allocation6], 4294966400  ;;  %v564_v0 = vmov 0   ;;  %v449_v1 = vld [vmem:[#allocation5 + $0x4] ss:$12 sps:$4 sm:$0xff]   ;;  %v456_v7 = vld [vmem:[#allocation2 + $0x18] sm:$0xff]  }
  0x39   :  { %173 = vmatprep.mubr.bf16.mxu0 %v564_v0  ;;  %202 = vmatprep.mubr.bf16.mxu1 %v564_v0  ;;  %v451_v2 = vld [vmem:[#allocation5] ss:$12 sps:$4 sm:$0xff]   ;;  %v452_v3 = vld [vmem:[#allocation5 + $0x1c] ss:$12 sps:$4 sm:$0xff]   ;;  %v454_v4 = vld [vmem:[#allocation5 + $0x18] ss:$12 sps:$4 sm:$0xff]  }
  0x3a   :  { %141 = vmatprep.subr.bf16.mxu0 %v449_v1  ;;  %434 = vmatprep.subr.bf16.mxu1 %v449_v1  ;;  %v455_v5 = vld [vmem:[#allocation2] sm:$0xff]   ;;  %v457_v6 = vld [vmem:[#allocation5 + $0x8] ss:$12 sps:$4 sm:$0xff]   ;;  %vm128_vm0 = vcmask 261120   ;;  %v409_v38 = vld [vmem:[#allocation7 + $0x2] ss:$0 sm:$0xff] }
  0x3b   :  { %142 = vmatpush1.bf16.msra.mxu0 %v451_v2  ;;  %436 = vmatpush1.bf16.msra.mxu1 %v451_v2  ;;  %v458_v8 = vld [vmem:[#allocation5 + $0x20] ss:$12 sps:$4 sm:$0xff]   ;;  %v460_v10 = vld [vmem:[#allocation2 + $0x10] sm:$0xff]   ;;  %s565_s30 = smov [#allocation8]  }
  0x3c   :  { %143 = vmatprep.subr.bf16.mxu0 %v452_v3  ;;  %435 = vmatprep.subr.bf16.mxu1 %v452_v3  ;;  %v459_v9 = vld [vmem:[#allocation2 + $0x8] sm:$0xff]   ;;  %v413_v35 = vld [vmem:[#allocation7 + $0x6] ss:$0 sm:$0xff]  ;;  %v414_v43 = vld [vmem:[#allocation7 + $0x7] ss:$0 sm:$0xff]  ;;  %s379_s5 = sshll.u32 %s565_s30, 4  ;;  %s380_s5 = int_to_ptr.vmem [resolvable:$true] %s379_s5 }
  0x3d   :  { %v410_v47 = vld [vmem:[#allocation7 + $0x3] ss:$0 sm:$0xff]  ;;  %v408_v49 = vld [vmem:[#allocation7 + $0x1] ss:$0 sm:$0xff]  ;;  %v412_v51 = vld [vmem:[#allocation7 + $0x5] ss:$0 sm:$0xff]  ;;  %p532_p11 = scmp.lt.s32.totalorder %s380_s5, %s380_s5 }
  0x3e   :  { %v407_v54 = vld [vmem:[#allocation7] ss:$0 sm:$0xff]  ;;  %v411_v56 = vld [vmem:[#allocation7 + $0x4] ss:$0 sm:$0xff]  ;;  %s527_s6 = scalar_lea.vmem %s380_s5, 128 }
  0x3f   :  { %144 = vmatpush1.bf16.msra.mxu0 %v454_v4  ;;  %437 = vmatpush1.bf16.msra.mxu1 %v454_v4  ;;  %p528_p10 = scmp.ne.s32.totalorder %s380_s5, %s527_s6  ;;  %p533_p12 = scmp.lt.s32.totalorder %s527_s6, %s527_s6 }
  0x40   :  { %422 = vmatprep.subr.bf16.mxu1 %v457_v6 }
  0x41   :  { %p534_p13 = por %p533_p12, %p532_p11 }
  0x42   :  { %399 = vmatmul.mubr.msk.bf16.vlgmr.msra.gmra.mrb[0].mxu0 %vm128_vm0, %v455_v5  ;;  %402 = vmatmul.mubr.msk.bf16.vlgmr.msra.gmra.mrb[0].mxu1 %vm128_vm0, %v456_v7 }
  0x43   :  { %423 = vmatpush3.bf16.msra.mxu1 %v457_v6  ;;  %182 = vmatprep.mubr.bf16.mxu0 %v564_v0  ;;  %v415_v6 = vld [vmem:[%s653_s3] ss:$0 sm:$0xff]  ;;  %p535_p0 = pnand %p534_p13, %p528_p10 }
  0x44   :  { %424 = vmatprep.subr.bf16.mxu1 %v458_v8  ;;  %426 = vmatprep.mubr.msk.bf16.mxu1 %vm128_vm0, %v455_v5 }
  0x47   :  { %425 = vmatpush3.bf16.msra.mxu1 %v458_v8 }
  0x4a   :  { %400 = vmatmul.mubr.msk.bf16.gmra.mrb[4].mxu0 %vm128_vm0, %v459_v9  ;;  %427 = vmatmul.mubr.msk.bf16.vlgmr.msra.gmra.mrb[4].mxu1 %vm128_vm0, %v459_v9 }
  0x4b   :  { %192 = vmatprep.mubr.bf16.mxu0 %v564_v0  ;;  %430 = vmatprep.mubr.msk.bf16.mxu1 %vm128_vm0, %v460_v10 }
  0x52   :  { %401 = vmatmul.mubr.msk.bf16.gmra.mrb[8].mxu0 %vm128_vm0, %v460_v10  ;;  %431 = vmatmul.mubr.msk.bf16.gmra.mrb[8].mxu1 %vm128_vm0, %v456_v7 }
 0x115   :  { %v175_v11 = vpop.f32.mrb[0].mxu0  ;;  %v204_v12 = vpop.f32.mrb[0].mxu1 }
 0x116   :  { %v177_v13 = vpop.f32.mrb[1].mxu0  ;;  %v206_v14 = vpop.f32.mrb[1].mxu1 }
 0x117   :  { %v178_v15 = vpop.f32.mrb[2].mxu0  ;;  %v208_v16 = vpop.f32.mrb[2].mxu1 }
 0x118   :  { %v180_v17 = vpop.f32.mrb[3].mxu0  ;;  %v210_v18 = vpop.f32.mrb[3].mxu1  ;;  %v355_v57 = vadd.f32 %v414_v43, %v208_v16 }
 0x119   :  { %v276_v19 = vadd.f32 %v180_v17, %v175_v11  ;;  %v282_v20 = vadd.f32 %v210_v18, %v204_v12 }
 0x11b   :  { %v354_v48 = vadd.f32 %v413_v35, %v282_v20 }
 0x11d   :  { %v184_v21 = vpop.f32.mrb[4].mxu0  ;;  %v428_v22 = vpop.f32.mrb[4].mxu1 }
 0x11e   :  { %v284_v23 = vadd.f32 %v428_v22, %v276_v19  ;;  %v186_v24 = vpop.f32.mrb[5].mxu0  ;;  %v247_v25 = vpop.f32.mrb[5].mxu1 }
 0x11f   :  { %v277_v26 = vadd.f32 %v186_v24, %v178_v15  ;;  %v188_v27 = vpop.f32.mrb[6].mxu0  ;;  %v429_v28 = vpop.f32.mrb[6].mxu1 }
 0x120   :  { %v190_v29 = vpop.f32.mrb[7].mxu0  ;;  %v249_v30 = vpop.f32.mrb[7].mxu1  ;;  %v348_v63 = vadd.f32 %v407_v54, %v284_v23 }
 0x121   :  { %v285_v31 = vadd.f32 %v429_v28, %v277_v26  ;;  %v278_v32 = vadd.f32 %v190_v29, %v184_v21 }
 0x123   :  { %v349_v61 = vadd.f32 %v408_v49, %v285_v31 }
 0x125   :  { %v194_v33 = vpop.f32.mrb[8].mxu0  ;;  %v432_v34 = vpop.f32.mrb[8].mxu1 }
 0x126   :  { %v196_v36 = vpop.f32.mrb[9].mxu0  ;;  %v261_v37 = vpop.f32.mrb[9].mxu1 }
 0x127   :  { %v279_v39 = vadd.f32 %v196_v36, %v188_v27  ;;  %v286_v40 = vadd.f32 %v278_v32, %v261_v37  ;;  %v198_v41 = vpop.f32.mrb[10].mxu0  ;;  %v433_v42 = vpop.f32.mrb[10].mxu1 }
 0x128   :  { %v281_v44 = vadd.f32 %v206_v14, %v198_v41  ;;  %v200_v45 = vpop.f32.mrb[11].mxu0  ;;  %v264_v46 = vpop.f32.mrb[11].mxu1 }
 0x129   :  { %v350_v50 = vadd.f32 %v409_v38, %v286_v40  ;;  %v280_v52 = vadd.f32 %v200_v45, %v194_v33  ;;  %v287_v53 = vadd.f32 %v279_v39, %v264_v46 }
 0x12a   :  { %v289_v55 = vadd.f32 %v433_v42, %v281_v44 }
 0x12b   :  { %v358_v58 = vmax.f32 %v350_v50, %v354_v48  ;;  %v288_v59 = vadd.f32 %v432_v34, %v280_v52  ;;  %v351_v60 = vadd.f32 %v410_v47, %v287_v53 }
 0x12c   :  { %v353_v62 = vadd.f32 %v412_v51, %v289_v55 }
 0x12d   :  { %v352_v0 = vadd.f32 %v411_v56, %v288_v59  ;;  %v359_v1 = vmax.f32 %v351_v60, %v355_v57 }
 0x12e   :  { %v357_v2 = vmax.f32 %v349_v61, %v353_v62 }
 0x12f   :  { %v356_v3 = vmax.f32 %v348_v63, %v352_v0  ;;  %v361_v4 = vmax.f32 %v358_v58, %v359_v1 }
 0x131   :  { %v360_v5 = vmax.f32 %v356_v3, %v357_v2 }
 0x133   :  { %v362_v7 = vmax.f32 %v360_v5, %v361_v4 }
 0x135   :  { %v370_v8 = vadd.f32 %v415_v6, %v362_v7 }
 0x137   :  { %v371_v9 = vmax.f32 %v370_v8, 0.0 }
 0x139   :  { %372 = vst [vmem:[#allocation8] sm:$0xff] %v371_v9 }
 0x13a   :  { %538 = shalt.err (!%p535_p0)
}
 0x13b   :  { %s539_s9 = scalar_lea.hbm %s654_s4, 128 }
 0x13c   :  { %p540_p1 = scmp.ne.s32.totalorder %s654_s4, %s539_s9  ;;  %p543_p2 = scmp.lt.u32.totalorder %s539_s9, %s654_s4 }
 0x13e   :  { %p545_p3 = pnand %p543_p2, %p540_p1 }
 0x140   :  { %548 = shalt.err (!%p545_p3)
}
 0x141   :  { %382 = dma.vmem_to_hbm [thread:$0]  %s380_s5, 128, %s654_s4, [#allocation4]  }
 0x142   :  { %553 = dma.done.wait [#allocation4], 128  }
 0x143   :  { %554 = vsyncadd [#allocation4], 4294967168 }
 0x144   :  { %386 = vsyncpa [#allocation3], 1 }
 0x145   :  { %387 = vsyncpa [#allocation6], 1 }
 0x146   :  { %388 = vsyncpa [#allocation4], 1 }

</bundles_post_ra>
